<compile_context>
chip_gen: v5e
topology: v5e:2x2
jax: 0.10.0
libtpu: 0.0.40
codegen_flags: <defaults>
</compile_context>

<pallas_src>
import functools

import jax
import jax.numpy as jnp
from jax import lax
from jax.experimental import pallas as pl
from jax.experimental.pallas import tpu as pltpu


def _sobelxy_kernel(x_ref, above_ref, below_ref, o_ref, *,
                    h_total, tile_h, halo_rows, use_rolls):
    # x_ref:     (Bt, tile_h,    W)  main row-slab
    # above_ref: (Bt, halo_rows, W)  block whose LAST row is the row above the slab
    # below_ref: (Bt, halo_rows, W)  block whose FIRST row is the row below the slab
    # o_ref:     (Bt, tile_h,    W)
    r = pl.program_id(1)
    w = x_ref.shape[-1]

    x = x_ref[...].astype(jnp.float32)
    # Pull only the single needed halo row into vregs (not the whole 8-row block).
    top = above_ref[:, halo_rows - 1:halo_rows, :].astype(jnp.float32)
    bot = below_ref[:, 0:1, :].astype(jnp.float32)

    # conv2d(padding=1) zero-row semantics: cheap scalar-predicated selects on
    # the 1-row halos; the main slab is masked only if the tiling leaves a
    # partial (garbage) last slab -- decided statically.
    top = jnp.where(r * tile_h - 1 >= 0, top, 0.0)
    bot = jnp.where((r + 1) * tile_h < h_total, bot, 0.0)
    if h_total % tile_h != 0:
        row_g = r * tile_h + lax.broadcasted_iota(jnp.int32, x.shape, 1)
        x = jnp.where(row_g < h_total, x, 0.0)

    if use_rolls:
        # ---- fast path: W % 128 == 0 and tile_h % 8 == 0 --------------------
        def hpass(v):
            # horizontal passes d = x(j+1)-x(j-1), s = x(j-1)+2x(j)+x(j+1):
            # lane shifts on the XLU via pltpu.roll, single border column masked.
            lane = lax.broadcasted_iota(jnp.int32, v.shape, 2)
            vl = jnp.where(lane >= 1, pltpu.roll(v, 1, axis=2), 0.0)      # x(j-1)
            vr = jnp.where(lane <= w - 2, pltpu.roll(v, w - 1, axis=2), 0.0)  # x(j+1)
            return vr - vl, vl + 2.0 * v + vr

        d, s = hpass(x)
        d_top, s_top = hpass(top)
        d_bot, s_bot = hpass(bot)

        # Vertical 3-tap combine on the XLU (sublane rolls).  Rows 0 and
        # tile_h-1 wrap around; they are re-written below with the halo rows.
        d_up, d_dn = pltpu.roll(d, 1, axis=1), pltpu.roll(d, tile_h - 1, axis=1)
        s_up, s_dn = pltpu.roll(s, 1, axis=1), pltpu.roll(s, tile_h - 1, axis=1)
        gx = d_up + 2.0 * d + d_dn
        gy = s_up - s_dn
        o_ref[...] = (jnp.abs(gx) + jnp.abs(gy)).astype(o_ref.dtype)

        # boundary-row patches (1 row each, negligible cost)
        gx0 = d_top + 2.0 * d[:, 0:1, :] + d[:, 1:2, :]
        gy0 = s_top - s[:, 1:2, :]
        o_ref[:, 0:1, :] = (jnp.abs(gx0) + jnp.abs(gy0)).astype(o_ref.dtype)

        gxl = d[:, tile_h - 2:tile_h - 1, :] + 2.0 * d[:, tile_h - 1:tile_h, :] + d_bot
        gyl = s[:, tile_h - 2:tile_h - 1, :] - s_bot
        o_ref[:, tile_h - 1:tile_h, :] = (jnp.abs(gxl) + jnp.abs(gyl)).astype(o_ref.dtype)
    else:
        # ---- ragged fallback (W % 128 != 0 or tile_h % 8 != 0) --------------
        # Lanes are mostly padding here anyway, so concat-based shifts are OK.
        xp = jnp.concatenate([top, x, bot], axis=1)            # (Bt, tile_h+2, W)
        zcol = jnp.zeros_like(xp[:, :, :1])
        xl = jnp.concatenate([zcol, xp[:, :, :-1]], axis=2)    # x(i, j-1)
        xr = jnp.concatenate([xp[:, :, 1:], zcol], axis=2)     # x(i, j+1)
        d = xr - xl
        s = xl + 2.0 * xp + xr
        gx = d[:, :-2, :] + 2.0 * d[:, 1:-1, :] + d[:, 2:, :]
        gy = s[:, :-2, :] - s[:, 2:, :]
        o_ref[...] = (jnp.abs(gx) + jnp.abs(gy)).astype(o_ref.dtype)


def _pick_tile_rows(h, cap):
    """Largest row-tile <= cap that is a multiple of 8, preferring a divisor of h."""
    if h % 8 != 0:
        return h                       # (8,128) rule: must be full extent then
    cap = max(8, min(h, (cap // 8) * 8))
    for cand in range(cap, 7, -8):     # prefer no partial last slab
        if h % cand == 0:
            return cand
    return cap


def sobelxy(x, *, block_rows=None, batch_block=None):
    """x: (N, 1, H, W) -> (N, 1, H, W), matching the PyTorch Sobelxy module."""
    N, C, H, W = x.shape
    assert C == 1, "Sobelxy weights are (1,1,3,3); input must be single-channel"
    x3 = x.reshape(N, H, W)
    itemsize = jnp.dtype(x.dtype).itemsize

    # chip-aware block sizing: small blocks on 64-MiB-VMEM v7x, larger on v5e/v6e
    try:
        vmem_cap = int(pltpu.get_tpu_info().vmem_capacity_bytes)
    except Exception:
        vmem_cap = 64 << 20
    target_bytes = (1 << 20) if vmem_cap <= (64 << 20) else (2 << 20)

    # --- auto blocking -------------------------------------------------------
    small = N * H * W * itemsize <= 2 * target_bytes
    if small:
        if N >= 2:
            auto_bt, auto_th = pl.cdiv(N, 2), H      # >=2 batch blocks (2 TCs on v7x)
        elif H % 8 == 0 and H >= 16:
            auto_bt, auto_th = 1, _pick_tile_rows(H, H // 2)   # >=2 row slabs
        else:
            auto_bt, auto_th = N, H
    else:
        auto_bt = 1
        if H % 8 != 0:
            auto_th = H                  # block must be 8-aligned or full extent
        else:
            rows_fit = max(8, (target_bytes // max(1, W * itemsize)) // 8 * 8)
            auto_th = _pick_tile_rows(H, rows_fit)

    bt = batch_block if batch_block is not None else auto_bt
    th = block_rows if block_rows is not None else auto_th
    assert th % 8 == 0 or th == H, (
        "block_rows must be a multiple of 8 (or equal to H) for correct halo indexing")
    assert 1 <= bt <= N

    hrows = 8 if H >= 8 else H
    nb = pl.cdiv(N, bt)
    nr = pl.cdiv(H, th)
    n_hblocks = pl.cdiv(H, hrows)
    spt = max(th // hrows, 1)
    use_rolls = (W % 128 == 0) and (th % 8 == 0)

    def main_idx(b, r):
        return (b, r, 0)

    def above_idx(b, r):
        return (b, jnp.maximum(r * spt - 1, 0), 0)

    def below_idx(b, r):
        return (b, jnp.minimum((r + 1) * spt, n_hblocks - 1), 0)

    # VMEM budget: double-buffered pipeline blocks + in-kernel f32 temporaries.
    main_blk = bt * th * W * itemsize
    halo_blk = bt * hrows * W * itemsize
    f32_tmp = bt * th * W * 4
    need = 2 * (2 * main_blk + 2 * halo_blk) + 8 * f32_tmp + (2 << 20)
    cap = (48 << 20) if vmem_cap <= (64 << 20) else (96 << 20)
    vmem_limit = int(min(cap, max(16 << 20, need)))

    kernel = functools.partial(_sobelxy_kernel, h_total=H, tile_h=th,
                               halo_rows=hrows, use_rolls=use_rolls)

    out = pl.pallas_call(
        kernel,
        out_shape=jax.ShapeDtypeStruct((N, H, W), x.dtype),
        grid=(nb, nr),
        in_specs=[
            pl.BlockSpec((bt, th, W), main_idx),
            pl.BlockSpec((bt, hrows, W), above_idx),
            pl.BlockSpec((bt, hrows, W), below_idx),
        ],
        out_specs=pl.BlockSpec((bt, th, W), main_idx),
        compiler_params=pltpu.CompilerParams(
            dimension_semantics=("parallel", "parallel"),
            vmem_limit_bytes=vmem_limit,
        ),
    )(x3, x3, x3)
    return out.reshape(N, C, H, W)


def _reference(x):
    # pure-JAX reference of the PyTorch forward, for a correctness check
    kx = jnp.array([[-1., 0., 1.], [-2., 0., 2.], [-1., 0., 1.]], jnp.float32)
    ky = jnp.array([[1., 2., 1.], [0., 0., 0.], [-1., -2., -1.]], jnp.float32)
    w = jnp.stack([kx, ky])[:, None, :, :]  # (2,1,3,3)
    y = lax.conv_general_dilated(
        x, w, window_strides=(1, 1), padding=((1, 1), (1, 1)),
        dimension_numbers=("NCHW", "OIHW", "NCHW"))
    return jnp.abs(y[:, 0:1]) + jnp.abs(y[:, 1:2])


if __name__ == "__main__":
    key = jax.random.PRNGKey(0)
    k1, k2 = jax.random.split(key)

    # small shape consistent with the module (single channel); ragged-W fallback path
    x = jax.random.normal(k1, (2, 1, 16, 16), dtype=jnp.float32)
    out = sobelxy(x)
    jax.block_until_ready(out)
    ref = _reference(x)
    assert out.shape == (2, 1, 16, 16)
    assert jnp.allclose(out, ref, atol=1e-4, rtol=1e-5)

    # lane-aligned fast path: XLU rolls, halos, partial last slab (40 % 16 != 0)
    x2 = jax.random.normal(k2, (2, 1, 40, 128), dtype=jnp.float32)
    out2 = sobelxy(x2, block_rows=16, batch_block=1)
    jax.block_until_ready(out2)
    ref2 = _reference(x2)
    assert jnp.allclose(out2, ref2, atol=1e-4, rtol=1e-5)

    print("KERNEL_OK")
</pallas_src>

<mosaic_0001>
module attributes {stable_mosaic.version = 11 : i64} {
  func.func @_sobelxy_kernel(%arg0: i32, %arg1: i32, %arg2: memref<1x16x16xf32, #tpu.memory_space<vmem>>, %arg3: memref<1x8x16xf32, #tpu.memory_space<vmem>>, %arg4: memref<1x8x16xf32, #tpu.memory_space<vmem>>, %arg5: memref<1x16x16xf32, #tpu.memory_space<vmem>>) attributes {dimension_semantics = [#tpu.dimension_semantics<parallel>, #tpu.dimension_semantics<parallel>], iteration_bounds = array<i64: 2, 1>, scalar_prefetch = 0 : i64, scratch_operands = 0 : i64, tpu.core_type = #tpu.core_type<tc>, window_params = [{transform_indices = @transform_0, window_bounds = array<i64: 1, 16, 16>}, {transform_indices = @transform_1, window_bounds = array<i64: 1, 8, 16>}, {transform_indices = @transform_2, window_bounds = array<i64: 1, 8, 16>}, {transform_indices = @transform_3, window_bounds = array<i64: 1, 16, 16>}]} {
    %c0 = arith.constant 0 : index
    %c0_0 = arith.constant 0 : index
    %c0_1 = arith.constant 0 : index
    %0 = vector.load %arg2[%c0, %c0_0, %c0_1] : memref<1x16x16xf32, #tpu.memory_space<vmem>>, vector<1x16x16xf32>
    %c0_2 = arith.constant 0 : index
    %c7 = arith.constant 7 : index
    %c0_3 = arith.constant 0 : index
    %1 = vector.load %arg3[%c0_2, %c7, %c0_3] : memref<1x8x16xf32, #tpu.memory_space<vmem>>, vector<1x1x16xf32>
    %c0_4 = arith.constant 0 : index
    %c0_5 = arith.constant 0 : index
    %c0_6 = arith.constant 0 : index
    %2 = vector.load %arg4[%c0_4, %c0_5, %c0_6] : memref<1x8x16xf32, #tpu.memory_space<vmem>>, vector<1x1x16xf32>
    %c16_i32 = arith.constant 16 : i32
    %3 = arith.muli %arg1, %c16_i32 : i32
    %c1_i32 = arith.constant 1 : i32
    %4 = arith.subi %3, %c1_i32 : i32
    %c0_i32 = arith.constant 0 : i32
    %5 = arith.cmpi sge, %4, %c0_i32 : i32
    %cst = arith.constant 0.000000e+00 : f32
    %6 = vector.broadcast %cst : f32 to vector<1x1x16xf32>
    %7 = arith.select %5, %1, %6 : vector<1x1x16xf32>
    %c1_i32_7 = arith.constant 1 : i32
    %8 = arith.addi %arg1, %c1_i32_7 : i32
    %c16_i32_8 = arith.constant 16 : i32
    %9 = arith.muli %8, %c16_i32_8 : i32
    %c16_i32_9 = arith.constant 16 : i32
    %10 = arith.cmpi slt, %9, %c16_i32_9 : i32
    %cst_10 = arith.constant 0.000000e+00 : f32
    %11 = vector.broadcast %cst_10 : f32 to vector<1x1x16xf32>
    %12 = arith.select %10, %2, %11 : vector<1x1x16xf32>
    %13 = tpu.concatenate %7, %0, %12 in 1 : vector<1x1x16xf32>, vector<1x16x16xf32>, vector<1x1x16xf32> -> vector<1x18x16xf32>
    %cst_11 = arith.constant 0.000000e+00 : f32
    %14 = vector.broadcast %cst_11 : f32 to vector<1x18x1xf32>
    %15 = vector.extract_strided_slice %13 {offsets = [0, 0, 0], sizes = [1, 18, 15], strides = [1, 1, 1]} : vector<1x18x16xf32> to vector<1x18x15xf32>
    %16 = tpu.concatenate %14, %15 in 2 : vector<1x18x1xf32>, vector<1x18x15xf32> -> vector<1x18x16xf32>
    %17 = vector.extract_strided_slice %13 {offsets = [0, 0, 1], sizes = [1, 18, 15], strides = [1, 1, 1]} : vector<1x18x16xf32> to vector<1x18x15xf32>
    %18 = tpu.concatenate %17, %14 in 2 : vector<1x18x15xf32>, vector<1x18x1xf32> -> vector<1x18x16xf32>
    %19 = arith.subf %18, %16 : vector<1x18x16xf32>
    %cst_12 = arith.constant 2.000000e+00 : f32
    %20 = vector.broadcast %cst_12 : f32 to vector<1x18x16xf32>
    %21 = arith.mulf %20, %13 : vector<1x18x16xf32>
    %22 = arith.addf %16, %21 : vector<1x18x16xf32>
    %23 = arith.addf %22, %18 : vector<1x18x16xf32>
    %24 = vector.extract_strided_slice %19 {offsets = [0, 0, 0], sizes = [1, 16, 16], strides = [1, 1, 1]} : vector<1x18x16xf32> to vector<1x16x16xf32>
    %25 = vector.extract_strided_slice %19 {offsets = [0, 1, 0], sizes = [1, 16, 16], strides = [1, 1, 1]} : vector<1x18x16xf32> to vector<1x16x16xf32>
    %cst_13 = arith.constant 2.000000e+00 : f32
    %26 = vector.broadcast %cst_13 : f32 to vector<1x16x16xf32>
    %27 = arith.mulf %26, %25 : vector<1x16x16xf32>
    %28 = arith.addf %24, %27 : vector<1x16x16xf32>
    %29 = vector.extract_strided_slice %19 {offsets = [0, 2, 0], sizes = [1, 16, 16], strides = [1, 1, 1]} : vector<1x18x16xf32> to vector<1x16x16xf32>
    %30 = arith.addf %28, %29 : vector<1x16x16xf32>
    %31 = vector.extract_strided_slice %23 {offsets = [0, 0, 0], sizes = [1, 16, 16], strides = [1, 1, 1]} : vector<1x18x16xf32> to vector<1x16x16xf32>
    %32 = vector.extract_strided_slice %23 {offsets = [0, 2, 0], sizes = [1, 16, 16], strides = [1, 1, 1]} : vector<1x18x16xf32> to vector<1x16x16xf32>
    %33 = arith.subf %31, %32 : vector<1x16x16xf32>
    %34 = math.absf %30 : vector<1x16x16xf32>
    %35 = math.absf %33 : vector<1x16x16xf32>
    %36 = arith.addf %34, %35 : vector<1x16x16xf32>
    %c0_14 = arith.constant 0 : index
    %c0_15 = arith.constant 0 : index
    %c0_16 = arith.constant 0 : index
    %37 = vector.load %arg5[%c0_14, %c0_15, %c0_16] : memref<1x16x16xf32, #tpu.memory_space<vmem>>, vector<1x16x16xf32>
    tpu.vector_store %arg5[%c0_14, %c0_15, %c0_16], %36 {strides = array<i32>} : memref<1x16x16xf32, #tpu.memory_space<vmem>>, vector<1x16x16xf32>,
    return
  }
  func.func @transform_0(%arg0: i32, %arg1: i32) -> (i32, i32, i32) {
    %c0_i32 = arith.constant 0 : i32
    %c0_i32_0 = arith.constant 0 : i32
    return %arg0, %arg1, %c0_i32 : i32, i32, i32
  }
  func.func @transform_1(%arg0: i32, %arg1: i32) -> (i32, i32, i32) {
    %c2_i32 = arith.constant 2 : i32
    %0 = arith.muli %arg1, %c2_i32 : i32
    %c1_i32 = arith.constant 1 : i32
    %1 = arith.subi %0, %c1_i32 : i32
    %c0_i32 = arith.constant 0 : i32
    %2 = arith.maxsi %1, %c0_i32 : i32
    %c0_i32_0 = arith.constant 0 : i32
    %c0_i32_1 = arith.constant 0 : i32
    return %arg0, %2, %c0_i32_0 : i32, i32, i32
  }
  func.func @transform_2(%arg0: i32, %arg1: i32) -> (i32, i32, i32) {
    %c1_i32 = arith.constant 1 : i32
    %0 = arith.addi %arg1, %c1_i32 : i32
    %c2_i32 = arith.constant 2 : i32
    %1 = arith.muli %0, %c2_i32 : i32
    %c1_i32_0 = arith.constant 1 : i32
    %2 = arith.minsi %1, %c1_i32_0 : i32
    %c0_i32 = arith.constant 0 : i32
    %c0_i32_1 = arith.constant 0 : i32
    return %arg0, %2, %c0_i32 : i32, i32, i32
  }
  func.func @transform_3(%arg0: i32, %arg1: i32) -> (i32, i32, i32) {
    %c0_i32 = arith.constant 0 : i32
    %c0_i32_0 = arith.constant 0 : i32
    return %arg0, %arg1, %c0_i32 : i32, i32, i32
  }
}

</mosaic_0001>

<bundles_post_ra>
// kernel: tpu_custom_call.1
= control target key start
LH: loop header
LB: loop body
LE: loop exit
PB: predicated region body
PF: predicated region fallthrough
CT: control target
= control target key end

     0   :  { %s1088_s0 = inlined_call_operand.hbm [shape: f32[2,16,16], index: 0, kind: input, shape index: {}]   ;;  %s1089_s1 = inlined_call_operand.hbm [shape: f32[2,16,16], index: 1, kind: input, shape index: {}]   ;;  %s1090_s2 = inlined_call_operand.hbm [shape: f32[2,16,16], index: 2, kind: input, shape index: {}]   ;;  %s1091_s3 = inlined_call_operand.hbm [shape: f32[2,16,16], index: 3, kind: output, shape index: {}]  }
   0x1   :  { %1095 = sst [smem:[#allocation16_spill]] %s1088_s0 }
   0x2   :  { %1096 = sst [smem:[#allocation17_spill]] %s1089_s1 }
   0x3   :  { %8 = vsyncpa [#allocation3], 0 }
   0x4   :  { %10 = vsyncpa [#allocation3 + $0x1], 0 }
   0x5   :  { %11 = vsyncpa [#allocation6], 0 }
   0x6   :  { %13 = vsyncpa [#allocation6 + $0x1], 0 }
   0x7   :  { %14 = vsyncpa [#allocation4], 0 }
   0x8   :  { %16 = vsyncpa [#allocation4 + $0x1], 0  ;;  %s913_s12 = smov 0   ;;  %s915_s13 = smov 0  }
   0x9   :  { %s917_s14 = smov 0   ;;  %s919_s15 = smov 0  }
   0xa   :  { %s921_s16 = smov 0   ;;  %s923_s17 = smov 0  }
   0xb LB: > { %1097 = sst [smem:[#allocation12_spill]] %s872_s14  ;;  %s944_s18 = sadd.s32 4294967295, %s884_s17   ;;  %s884_s17 = sphi %s923_s17, %s22_s17   ;;  %s880_s16 = sphi %s921_s16, %s1115_s16   ;;  %s876_s15 = sphi %s919_s15, %s1111_s15   ;;  %s872_s14 = sphi %s917_s14, %s1110_s14   ;;  %s868_s13 = sphi %s915_s13, %s1114_s13   ;;  %s864_s12 = sphi %s913_s12, %s1113_s12  }
   0xc   : > { %1098 = sst [smem:[#allocation13_spill]] %s880_s16  ;;  %s601_s19 = sadd.s32 4294967294, %s884_s17  }
   0xd   : > { %s34_s20 = sadd.s32 1, %s880_s16  ;;  %s43_s21 = sadd.s32 1, %s872_s14 }
   0xe   : > { %p36_p0 = scmp.ge.s32.totalorder %s34_s20, 2  ;;  %p50_p1 = scmp.ne.s32.totalorder %s872_s14, %s868_s13 }
   0xf   : > { %p51_p2 = scmp.eq.s32.totalorder %s884_s17, 0  ;;  %p56_p3 = scmp.ne.s32.totalorder %s868_s13, %s864_s12 }
  0x10   : > { %s1117_s20 = smov (%p36_p0, %s34_s20), 0  ;;  %p57_p5 = scmp.eq.s32.totalorder %s944_s18, 0 }
  0x11   : > { %1099 = sst [smem:[#allocation14_spill]] %s1117_s20  ;;  %p956_p4 = por %p51_p2, %p50_p1 }
  0x12   : > { %s38_s23 = ssub.s32 %s880_s16, %s1117_s20  ;;  %p154_p6 = scmp.eq.s32.totalorder %s944_s18, 1 }
  0x13   : > { %p41_p7 = scmp.eq.s32.totalorder %s38_s23, 0  ;;  %p964_p8 = por %p57_p5, %p56_p3 }
  0x14   : > { %p968_p9 = por %p154_p6, %p50_p1  ;;  %p160_p10 = scmp.eq.s32.totalorder %s601_s19, 1 }
  0x15   : > { %s973_s26 = scalar_select %p41_p7, %s872_s14, %s43_s21  }
  0x16   : > { %p975_p11 = por %p160_p10, %p56_p3  ;;  %p603_p12 = scmp.ge.s32.totalorder %s884_s17, 2 }
  0x17   : > { %1103 = sst [smem:[#allocation15_spill]] %s973_s26  ;;  %p651_p13 = scmp.lt.s32.totalorder %s884_s17, 2 }
  0x18   : > { %s982_s28 = sand.u32 1, %s872_s14   ;;  %s985_s29 = sshll.u32 %s880_s16, 4 }
  0x19   : > { %s204_s30 = sand.u32 1, %s884_s17   ;;  %s1105_s0 = sld [smem:[#allocation16_spill]] }
  0x1a   : > { %p994_p0 = pnand %p651_p13, %p956_p4  ;;  %s607_s8 = sshll.u32 %s982_s28, 3 }
  0x1b   : > { %s1107_s1 = sld [smem:[#allocation17_spill]]  ;;  %s208_s19 = scalar_lea.vmem [#allocation5], %s607_s8 }
  0x1c   : > { %s222_s21 = sshll.u32 %s208_s19, 4  ;;  %s205_s4 = scalar_lea.sflag [#allocation6], %s204_s30  ;;  %s223_s21 = int_to_ptr.vmem [resolvable:$true] %s222_s21 }
  0x1d   : > { %p613_p1 = scmp.ge.s32.totalorder %s884_s17, 1  ;;  %p252_p2 = scmp.lt.s32.totalorder %s884_s17, 3 }
  0x1e   : > { %s604_s5 = sshll.u32 %s982_s28, 4  ;;  %s626_s30 = sadd.s32 8, %s985_s29 }
  0x1f   : > { %s191_s6 = scalar_lea.hbm %s1105_s0, %s985_s29  ;;  %p1007_p3 = pnand %p613_p1, %p252_p2 }
  0x20   : > { %s192_s9 = sshll.u32 %s191_s6, 4  ;;  %s184_s10 = scalar_lea.vmem [#allocation2], %s604_s5  ;;  %s193_s9 = int_to_ptr.hbm [resolvable:$true] %s192_s9 }
  0x21   : > { %s218_s11 = scalar_lea.hbm %s1107_s1, %s985_s29  ;;  %s194_s19 = sshll.u32 %s184_s10, 4  ;;  %s195_s19 = int_to_ptr.vmem [resolvable:$true] %s194_s19 }
  0x22   : > { %s220_s23 = sshll.u32 %s218_s11, 4  ;;  %s181_s11 = scalar_lea.sflag [#allocation3], %s982_s28  ;;  %s221_s23 = int_to_ptr.hbm [resolvable:$true] %s220_s23 }
  0x23   : > { %643 = dma.hbm_to_vmem [thread:$0]  (!%p994_p0), %s221_s23, 128, %s223_s21, %s205_s4  }
  0x24   : > { %s886_s0 = smov 128   ;;  %s887_s1 = smov 8  }
  0x25   : > { %640 = dma.hbm_to_vmem [thread:$0]  (!%p994_p0), %s193_s9, 256, %s195_s19, %s181_s11, %s886_s0, %s886_s0, %s887_s1  }
  0x26   : > { %s233_s21 = scalar_lea.vmem [#allocation7], %s607_s8  ;;  %s243_s26 = scalar_lea.hbm %s1090_s2, %s626_s30 }
  0x27   : > { %s247_s23 = sshll.u32 %s233_s21, 4  ;;  %s245_s14 = sshll.u32 %s243_s26, 4  ;;  %s248_s23 = int_to_ptr.vmem [resolvable:$true] %s247_s23  ;;  %s246_s14 = int_to_ptr.hbm [resolvable:$true] %s245_s14 }
  0x28   : > { %646 = dma.hbm_to_vmem [thread:$0]  (!%p994_p0), %s246_s14, 128, %s248_s23, %s205_s4  }
  0x29   : > { %256 = sbr.rel (%p1007_p3) target bundleno = 198 (0xc6), region = 32  ;;  %s1024_s28 = sand.u32 (!%p1007_p3), 1, %s868_s13  }
  0x2a   : > { %s614_s0 = sshll.u32 (!%p1007_p3), %s1024_s28, 4  ;;  %s259_s1 = scalar_lea.sflag (!%p1007_p3), [#allocation3], %s1024_s28 }
  0x2b   : > { %s262_s16 = scalar_lea.vmem (!%p1007_p3), [#allocation2], %s614_s0 }
  0x2e   : > { %851 = dma.done.wait (%p964_p8), %s259_s1, 256  }
  0x2f   : > { %853 = vsyncadd (%p964_p8), %s259_s1, 4294967040  ;;  %s268_s14 = sand.u32 1, %s944_s18  }
  0x30   : > { %s269_s20 = scalar_lea.sflag [#allocation6], %s268_s14 }
  0x31   : > { %855 = dma.done.wait (%p964_p8), %s269_s20, 256  }
  0x32   : > { %857 = vsyncadd (%p964_p8), %s269_s20, 4294967040  ;;  %v888_v0 = vmov 0.0   ;;  %v327_v2 = vld [vmem:[%s262_s16 + $0x8] sm:$0xff]  ;;  %vm346_vm0 = vcmask 1040384   ;;  %v326_v3 = vld [vmem:[%s262_s16] sm:$0xff]  ;;  %s889_s26 = smov 1  }
  0x33   : > { %v354_v1 = vrot.slane %v888_v0, 7  ;;  %v348_v4 = vrot.slane %v327_v2, 7  ;;  %v347_v5 = vrot.slane %v326_v3, 7  ;;  %s890_s18 = smov 127   ;;  %vm369_vm1 = vcmask 7168   ;;  %s627_s24 = sshll.u32 %s876_s15, 4 }
  0x34   : > { %vm382_vm2 = vcmask 121856   ;;  %vm404_vm3 = vcmask 1046528   ;;  %vm417_vm4 = vcmask 1045504   ;;  %s462_s7 = scalar_lea.hbm %s1091_s3, %s627_s24  ;;  %s315_s15 = scalar_lea.vmem [#allocation8], %s614_s0  ;;  %vm445_vm5 = vcmask 130048  }
  0x35   : > { %v357_v6 = vsel %vm346_vm0, %v348_v4, %v354_v1  ;;  %v356_v7 = vsel %vm346_vm0, 0.0, %v347_v5  ;;  %v349_v8 = vsel %vm346_vm0, %v347_v5, %v348_v4  ;;  %s463_s8 = sshll.u32 %s315_s15, 4  ;;  %s465_s4 = sshll.u32 %s462_s7, 4  ;;  %s464_s8 = int_to_ptr.vmem [resolvable:$true] %s463_s8  ;;  %s466_s4 = int_to_ptr.hbm [resolvable:$true] %s465_s4 }
  0x36   : > { %364 = vrot.lane.b32.xlu1 %v357_v6, %s889_s26  ;;  %360 = vrot.lane.b32.xlu0 %v356_v7, %s889_s26  ;;  %v391_v12 = vmul.f32 2.0, %v357_v6  ;;  %v389_v15 = vmul.f32 2.0, %v356_v7  ;;  %v390_v19 = vmul.f32 2.0, %v349_v8  ;;  %s449_s22 = scalar_lea.sflag [#allocation4], %s1024_s28  ;;  %s812_s5 = sshra.s32 %s466_s4, 4  ;;  %s813_s5 = int_to_ptr.hbm [resolvable:$true] %s812_s5 }
  0x37   : > { %375 = vrot.lane.b32.xlu2 %v349_v8, %s890_s18  ;;  %s814_s9 = scalar_lea.hbm %s813_s5, 16  ;;  %s818_s11 = scalar_lea.hbm %s1091_s3, 32 }
  0x38   : > { %p815_p4 = scmp.ne.s32.totalorder %s813_s5, %s814_s9  ;;  %p819_p7 = scmp.lt.s32.totalorder %s813_s5, %s1091_s3 }
  0x39   : > { %p820_p8 = scmp.lt.s32.totalorder %s818_s11, %s814_s9 }
  0x3a   : > { %p816_p5 = pnand %p815_p4, %p968_p9 }
  0x3b   : > { %p821_p10 = por %p820_p8, %p819_p7 }
  0x3c   : > { %p817_p6 = pneg %p816_p5 }
  0x3e   : > { %373 = vrot.lane.b32.xlu1 %v356_v7, %s890_s18  ;;  %362 = vrot.lane.b32.xlu0 %v349_v8, %s889_s26  ;;  %p822_p13 = pnand %p821_p10, %p817_p6 }
  0x3f   : > { %377 = vrot.lane.b32.xlu2 %v357_v6, %s890_s18 }
  0x91   : > { %v376_v9 = vpop.permute.xlu2 %375 }
  0x92   : > { %v384_v24 = vsel %vm382_vm2, %v376_v9, 0.0 }
  0x99   : > { %v378_v13 = vpop.permute.xlu2 %377 }
  0x9a   : > { %v385_v16 = vsel %vm382_vm2, %v378_v13, 0.0 }
  0xa8   : > { %v365_v10 = vpop.permute.xlu1 %364  ;;  %v361_v11 = vpop.permute.xlu0 %360 }
  0xa9   : > { %v372_v14 = vsel %vm369_vm1, 0.0, %v365_v10  ;;  %v370_v18 = vsel %vm369_vm1, 0.0, %v361_v11 }
  0xaa   : > { %v394_v17 = vadd.f32 %v391_v12, %v372_v14  ;;  %v388_v20 = vsub.f32 %v385_v16, %v372_v14  ;;  %v392_v21 = vadd.f32 %v389_v15, %v370_v18 }
  0xac   : > { %v397_v25 = vadd.f32 %v394_v17, %v385_v16  ;;  %v400_v32 = vmul.f32 2.0, %v388_v20  ;;  %v421_v46 = vrot.slane %v388_v20, 2 }
  0xae   : > { %v433_v36 = vrot.slane %v397_v25, 2  ;;  %v408_v40 = vrot.slane %v400_v32, 1 }
  0xb0   : > { %v374_v22 = vpop.permute.xlu1 %373  ;;  %v363_v23 = vpop.permute.xlu0 %362 }
  0xb1   : > { %v383_v26 = vsel %vm382_vm2, %v374_v22, 0.0  ;;  %v371_v27 = vsel %vm369_vm1, 0.0, %v363_v23 }
  0xb2   : > { %v386_v28 = vsub.f32 %v383_v26, %v370_v18  ;;  %v395_v29 = vadd.f32 %v392_v21, %v383_v26  ;;  %v387_v30 = vsub.f32 %v384_v24, %v371_v27  ;;  %v393_v31 = vadd.f32 %v390_v19, %v371_v27 }
  0xb4   : > { %v398_v33 = vmul.f32 2.0, %v386_v28  ;;  %v396_v34 = vadd.f32 %v393_v31, %v384_v24  ;;  %v399_v35 = vmul.f32 2.0, %v387_v30  ;;  %v430_v38 = vrot.slane %v395_v29, 2 }
  0xb5   : > { %v418_v41 = vrot.slane %v386_v28, 2  ;;  %v419_v43 = vrot.slane %v387_v30, 2 }
  0xb6   : > { %v405_v37 = vrot.slane %v398_v33, 1  ;;  %v431_v39 = vrot.slane %v396_v34, 2  ;;  %v406_v42 = vrot.slane %v399_v35, 1 }
  0xb7   : > { %v420_v53 = vsel %vm417_vm4, %v418_v41, %v419_v43  ;;  %v422_v54 = vsel %vm417_vm4, %v419_v43, %v421_v46 }
  0xb8   : > { %v432_v44 = vsel %vm417_vm4, %v430_v38, %v431_v39  ;;  %v434_v45 = vsel %vm417_vm4, %v431_v39, %v433_v36  ;;  %v407_v47 = vsel %vm404_vm3, %v405_v37, %v406_v42  ;;  %v409_v48 = vsel %vm404_vm3, %v406_v42, %v408_v40 }
  0xb9   : > { %v437_v49 = vsub.f32 %v395_v29, %v432_v44  ;;  %v412_v50 = vadd.f32 %v407_v47, %v386_v28  ;;  %v413_v51 = vadd.f32 %v409_v48, %v387_v30  ;;  %v438_v52 = vsub.f32 %v396_v34, %v434_v45 }
  0xbb   : > { %v425_v55 = vadd.f32 %v420_v53, %v412_v50  ;;  %v426_v56 = vadd.f32 %v422_v54, %v413_v51  ;;  %v441_v57 = vand.u32 2147483647, %v437_v49  ;;  %v442_v60 = vand.u32 2147483647, %v438_v52 }
  0xbd   : > { %v439_v58 = vand.u32 2147483647, %v425_v55  ;;  %v440_v59 = vand.u32 2147483647, %v426_v56 }
  0xbf   : > { %v443_v61 = vadd.f32 %v441_v57, %v439_v58  ;;  %v444_v62 = vadd.f32 %v442_v60, %v440_v59 }
  0xc1   : > { %446 = vst.msk [vmem:[%s315_s15] sm:$0xff] %vm445_vm5, %v443_v61 }
  0xc2   : > { %447 = vst.msk [vmem:[%s315_s15 + $0x8] sm:$0xff] %vm445_vm5, %v444_v62 }
  0xc3   : > { %825 = shalt.err (!%p822_p13)
}
  0xc4   : > { %s891_s23 = smov 128   ;;  %s892_s28 = smov 8  }
  0xc5   : > { %635 = dma.vmem_to_hbm [thread:$0]  (%p968_p9), %s464_s8, 256, %s466_s4, %s449_s22, %s891_s23, %s891_s23, %s892_s28  }
  0xc6 PF: > { %s480_s0 = sand.u32 1, %s864_s12   ;;  %p648_p0 = pnand %p603_p12, %p975_p11 }
  0xc7   : > { %s481_s1 = scalar_lea.sflag [#allocation4], %s480_s0 }
  0xc8   : > { %p649_p1 = pneg %p648_p0 }
  0xca   : > { %859 = dma.done.wait (%p649_p1), %s481_s1, 256  }
  0xcb   : > { %861 = vsyncadd (%p649_p1), %s481_s1, 4294967040  ;;  %s22_s17 = sadd.s32 1, %s884_s17   ;;  %s1109_s16 = sld [smem:[#allocation12_spill]] }
  0xcc   : > { %p19_p2 = scmp.ge.s32.totalorder %s22_s17, 4   ;;  %s1110_s14 = sld [smem:[#allocation15_spill]] }
  0xcd   : > { %s1111_s15 = sld [smem:[#allocation13_spill]]  ;;  %s1113_s12 = smov %s868_s13 }
  0xce   : > { %s1112_s25 = sld [smem:[#allocation14_spill]] }
  0xd0   :  { %21 = sbr.rel (!%p19_p2) target bundleno = 11 (0xb), region = 101 }
  0xd1   : > { %s1114_s13 = smov %s1109_s16 }
  0xd4   : > { %s1115_s16 = smov %s1112_s25 }
  0xd5   :  { %487 = vsyncpa [#allocation3], 1 }
  0xd6   :  { %489 = vsyncpa [#allocation3 + $0x1], 1 }
  0xd7   :  { %490 = vsyncpa [#allocation6], 1 }
  0xd8   :  { %492 = vsyncpa [#allocation6 + $0x1], 1 }
  0xd9   :  { %493 = vsyncpa [#allocation4], 1 }
  0xda   :  { %495 = vsyncpa [#allocation4 + $0x1], 1 }

</bundles_post_ra>
